<compile_context>
chip_gen: v6e
topology: v6e:2x2x1
jax: 0.10.0
libtpu: 0.0.40
codegen_flags: <defaults>
</compile_context>

<pallas_src>
import math
import functools

import jax
import jax.numpy as jnp
from jax.experimental import pallas as pl
from jax.experimental.pallas import tpu as pltpu


# ----------------------------------------------------------------------------
# Small helpers
# ----------------------------------------------------------------------------
def _sublanes(dtype):
    # native sublane multiple: 8 for 4-byte, 16 for 2-byte, 32 for 1-byte dtypes
    return max(8, 32 // jnp.dtype(dtype).itemsize)


def _row_tile(n, dtype, target=512):
    """Largest row tile <= target that divides n (else the full extent)."""
    if n <= target:
        return n
    sub = _sublanes(dtype)
    t = (target // sub) * sub
    while t >= sub:
        if n % t == 0:
            return t
        t -= sub
    return n


def _pick_tile(total, candidates):
    for c in candidates:
        if total >= c and total % c == 0:
            return c
    return total  # full extent (always a legal block)


def _vmem_limit():
    # raise the scoped-VMEM limit where the chip allows it; conservative fallback.
    try:
        cap = pltpu.get_tpu_info().vmem_capacity_bytes
        return int(min(cap * 3 // 4, 96 * 1024 * 1024))
    except Exception:
        return 32 * 1024 * 1024


# ----------------------------------------------------------------------------
# Kernel 1: row-tiled dense linear  y = x @ W_t + b   (W_t already (F_in, F_out), bf16)
# ----------------------------------------------------------------------------
def _linear_kernel(x_ref, w_ref, b_ref, o_ref):
    x = x_ref[...].astype(jnp.bfloat16)            # bf16 MXU operands, f32 accumulate
    y = jnp.dot(x, w_ref[...], preferred_element_type=jnp.float32)
    o_ref[...] = (y + b_ref[...]).astype(o_ref.dtype)


def linear(x, w_t, b, tm=512):
    n, f_in = x.shape
    f_out = w_t.shape[1]
    tm_eff = _row_tile(n, x.dtype, tm)
    grid = (pl.cdiv(n, tm_eff),)
    return pl.pallas_call(
        _linear_kernel,
        out_shape=jax.ShapeDtypeStruct((n, f_out), x.dtype),
        grid=grid,
        in_specs=[
            pl.BlockSpec((tm_eff, f_in), lambda i: (i, 0)),
            pl.BlockSpec((f_in, f_out), lambda i: (0, 0)),   # weight stays resident
            pl.BlockSpec((1, f_out), lambda i: (0, 0)),
        ],
        out_specs=pl.BlockSpec((tm_eff, f_out), lambda i: (i, 0)),
        compiler_params=pltpu.CompilerParams(
            dimension_semantics=("parallel",),
            vmem_limit_bytes=_vmem_limit()),
    )(x, w_t, b.reshape(1, f_out).astype(jnp.float32))


# ----------------------------------------------------------------------------
# Kernel 2: fused relative-position attention with online softmax over Tk tiles.
#   grid = (B, T1 tiles, Tk tiles);  all heads handled per step;
#   epilogue fuses the output projection; output store is lane-dense (tq, n_feat).
# ----------------------------------------------------------------------------
def _relpos_attn_kernel(q2_ref, kp_ref, v_ref, msk_ref, buv_ref, wo_ref, bo_ref,
                        o_ref, m_sc, l_sc, acc_sc, *, h, d_k, scale):
    ki = pl.program_id(2)
    nk = pl.num_programs(2)

    @pl.when(ki == 0)
    def _():
        m_sc[...] = jnp.full_like(m_sc, -1e30)
        l_sc[...] = jnp.zeros_like(l_sc)
        acc_sc[...] = jnp.zeros_like(acc_sc)

    # ---- hoisted, full-lane-width work (outside the head loop) ----
    mask_f = msk_ref[...].astype(jnp.float32)          # (1|tq, tk), 1 = keep
    bias = (mask_f - 1.0) * 1e30                       # additive 0 / -1e30 bias
    # per-head interleaved [ (q_h+bu_h)*s | (q_h+bv_h)*s ] in one VPU pass
    qcat = ((q2_ref[...].astype(jnp.float32) + buv_ref[...]) * scale
            ).astype(jnp.bfloat16)                     # (tq, 2*n_feat)
    kp = kp_ref[...]                                   # (tk, 2*n_feat) bf16: [k_h|p_h]
    v = v_ref[...]                                     # (tk, n_feat)  bf16

    for hd in range(h):                                # static unroll over heads
        c0, c1 = hd * 2 * d_k, (hd + 1) * 2 * d_k      # 64-lane-aligned head window
        sl = slice(hd * d_k, (hd + 1) * d_k)
        # fused matrix_ac + matrix_bd: one MXU matmul with a 2*d_k contraction
        s = jax.lax.dot_general(qcat[:, c0:c1], kp[:, c0:c1],
                                (((1,), (1,)), ((), ())),
                                preferred_element_type=jnp.float32)   # (tq, tk)
        s = s + bias
        m_old = m_sc[hd]                               # (tq, 1)
        m_new = jnp.maximum(m_old, jnp.max(s, axis=-1, keepdims=True))
        alpha = jnp.exp(m_old - m_new)
        p = jnp.exp(s - m_new) * mask_f                # masked_fill(mask, 0.0) semantics
        l_sc[:, sl] = alpha * l_sc[:, sl] + jnp.sum(p, axis=-1, keepdims=True)
        pv = jax.lax.dot_general(p.astype(jnp.bfloat16), v[:, sl],
                                 (((1,), (0,)), ((), ())),
                                 preferred_element_type=jnp.float32)  # (tq, d_k)
        acc_sc[:, sl] = alpha * acc_sc[:, sl] + pv
        m_sc[hd] = m_new

    @pl.when(ki == nk - 1)
    def _():
        # normalize (exact divide) + fused output projection, lane-dense store
        inv = 1.0 / jnp.maximum(l_sc[...], 1e-30)      # fully-masked rows: acc==0 -> 0
        ctx = (acc_sc[...] * inv).astype(jnp.bfloat16)
        out = jnp.dot(ctx, wo_ref[...], preferred_element_type=jnp.float32) + bo_ref[...]
        o_ref[...] = out.astype(o_ref.dtype)


def relpos_attention(q2, kp, v, mask, buv, wo_t, bo, h, d_k, out_dtype):
    B, T1, two_nf = q2.shape
    n_feat = two_nf // 2
    Tk = kp.shape[1]
    Tm = mask.shape[1]
    # TODO(synk): ragged (non-divisible) T1/Tk fall back to a single full block.
    tq = _pick_tile(T1, (256, 128, 64, 32, 16))
    tk = _pick_tile(Tk, (1024, 512, 256, 128))
    nq = T1 // tq
    nk = Tk // tk
    mask_blk = tq if Tm == T1 else 1
    mask_map = (lambda b, qi, ki: (b, qi, ki)) if Tm == T1 else (lambda b, qi, ki: (b, 0, ki))
    kern = functools.partial(_relpos_attn_kernel, h=h, d_k=d_k,
                             scale=1.0 / math.sqrt(d_k))
    return pl.pallas_call(
        kern,
        out_shape=jax.ShapeDtypeStruct((B, T1, n_feat), out_dtype),
        grid=(B, nq, nk),
        in_specs=[
            pl.BlockSpec((None, tq, 2 * n_feat), lambda b, qi, ki: (b, qi, 0)),
            pl.BlockSpec((None, tk, 2 * n_feat), lambda b, qi, ki: (b, ki, 0)),
            pl.BlockSpec((None, tk, n_feat), lambda b, qi, ki: (b, ki, 0)),
            pl.BlockSpec((None, mask_blk, tk), mask_map),
            pl.BlockSpec((1, 2 * n_feat), lambda b, qi, ki: (0, 0)),      # [bu|bv] row
            pl.BlockSpec((n_feat, n_feat), lambda b, qi, ki: (0, 0)),     # W_out resident
            pl.BlockSpec((1, n_feat), lambda b, qi, ki: (0, 0)),          # b_out
        ],
        out_specs=pl.BlockSpec((None, tq, n_feat), lambda b, qi, ki: (b, qi, 0)),
        scratch_shapes=[
            pltpu.VMEM((h, tq, 1), jnp.float32),      # running max per head
            pltpu.VMEM((tq, n_feat), jnp.float32),    # running denom (broadcast per head)
            pltpu.VMEM((tq, n_feat), jnp.float32),    # running context accumulator
        ],
        compiler_params=pltpu.CompilerParams(
            dimension_semantics=("parallel", "parallel", "arbitrary"),
            vmem_limit_bytes=_vmem_limit()),
    )(q2, kp, v, mask, buv, wo_t, bo)


# ----------------------------------------------------------------------------
# Full forward (layout plumbing in plain JAX, hot paths in Pallas)
# ----------------------------------------------------------------------------
def rel_position_mha_forward(params, query, key, value, mask=None,
                             pos_emb=None, cache=None):
    n_feat = query.shape[-1]
    h = params["h"]
    d_k = n_feat // h
    B, T1, _ = query.shape
    T2 = key.shape[1]
    bf = jnp.bfloat16

    # pre-transpose + pre-cast weights once: (F_in, F_out) bf16, resident in kernels
    wq_t = params["wq"].T.astype(bf)
    wk_t = params["wk"].T.astype(bf)
    wv_t = params["wv"].T.astype(bf)
    wo_t = params["wo"].T.astype(bf)
    wpos_t = params["wpos"].T.astype(bf)

    # projections (token-major (B, T, n_feat), f32 outputs for cache fidelity)
    if query is key and key is value:
        # fused QKV projection: one activation read, one launch, wide MXU N
        w_qkv_t = jnp.concatenate([wq_t, wk_t, wv_t], axis=1)
        b_qkv = jnp.concatenate([params["bq"], params["bk"], params["bv"]])
        qkv = linear(query.reshape(B * T1, n_feat), w_qkv_t, b_qkv)
        qkv = qkv.reshape(B, T1, 3 * n_feat)
        q = qkv[..., :n_feat]
        k = qkv[..., n_feat:2 * n_feat]
        v = qkv[..., 2 * n_feat:]
    else:
        q = linear(query.reshape(B * T1, n_feat), wq_t, params["bq"]).reshape(B, T1, n_feat)
        k = linear(key.reshape(B * T2, n_feat), wk_t, params["bk"]).reshape(B, T2, n_feat)
        v = linear(value.reshape(B * T2, n_feat), wv_t, params["bv"]).reshape(B, T2, n_feat)

    # cache: (Bc, h, Tc, 2*d_k) -> prepend in token-major layout
    if cache is not None and cache.shape[0] > 0:
        kc, vc = jnp.split(cache, 2, axis=-1)
        Bc, _, Tc, _ = kc.shape
        kc = jnp.transpose(kc, (0, 2, 1, 3)).reshape(Bc, Tc, n_feat)
        vc = jnp.transpose(vc, (0, 2, 1, 3)).reshape(Bc, Tc, n_feat)
        k = jnp.concatenate([kc, k], axis=1)
        v = jnp.concatenate([vc, v], axis=1)
    Tk = k.shape[1]

    # new_cache in torch layout (B, h, Tk, 2*d_k)
    k_heads = jnp.transpose(k.reshape(B, Tk, h, d_k), (0, 2, 1, 3))
    v_heads = jnp.transpose(v.reshape(B, Tk, h, d_k), (0, 2, 1, 3))
    new_cache = jnp.concatenate([k_heads, v_heads], axis=-1)

    # linear_pos (no bias)
    npos, Tp, _ = pos_emb.shape
    zero_b = jnp.zeros((n_feat,), dtype=jnp.float32)
    p = linear(pos_emb.reshape(npos * Tp, n_feat), wpos_t, zero_b).reshape(npos, Tp, n_feat)
    # TODO(synk): rel_shift branch (pos time == 2*T1-1) not implemented; this follows
    # the matrix_ac.shape == matrix_bd.shape path (pos time == key time) used by s3gen.
    assert Tp == Tk, "pos_emb time must equal key time (rel_shift path not implemented)"

    # wrapper-side layout plumbing (cheap XLA): per-head interleaved slabs in bf16
    q4 = q.reshape(B, T1, h, d_k)
    q2 = jnp.concatenate([q4, q4], axis=-1).reshape(B, T1, 2 * n_feat).astype(bf)
    k4 = k.reshape(B, Tk, h, d_k)
    p4 = jnp.broadcast_to(p, (B, Tk, n_feat)).reshape(B, Tk, h, d_k)
    kp = jnp.concatenate([k4, p4], axis=-1).reshape(B, Tk, 2 * n_feat).astype(bf)
    v_b = v.astype(bf)
    buv = jnp.concatenate([params["pos_bias_u"], params["pos_bias_v"]],
                          axis=-1).reshape(1, 2 * n_feat).astype(jnp.float32)

    # mask stays (B, 1|T1, Tk) but in bf16 (halved DMA); broadcast happens in-kernel
    if mask is None or mask.shape[-1] == 0:
        mask_b = jnp.ones((B, 1, Tk), bf)
    else:
        assert mask.shape[1] in (1, T1), "mask must be (B,1,T2) or (B,T1,T2)"
        mask_b = (mask[:, :, :Tk] != 0).astype(bf)

    out = relpos_attention(q2, kp, v_b, mask_b, buv, wo_t,
                           params["bo"].reshape(1, n_feat).astype(jnp.float32),
                           h, d_k, query.dtype)
    return out, new_cache


# ----------------------------------------------------------------------------
# Pure-JAX reference (same math, f32, no Pallas) for a sanity check
# ----------------------------------------------------------------------------
def _reference(params, query, key, value, mask, pos_emb):
    n_feat = query.shape[-1]
    h = params["h"]
    d_k = n_feat // h
    B, T1, _ = query.shape
    T2 = key.shape[1]
    lin = lambda x, w, b: x @ w.T + b
    q = lin(query, params["wq"], params["bq"]).reshape(B, T1, h, d_k)
    k = lin(key, params["wk"], params["bk"]).reshape(B, T2, h, d_k).transpose(0, 2, 1, 3)
    v = lin(value, params["wv"], params["bv"]).reshape(B, T2, h, d_k).transpose(0, 2, 1, 3)
    p = (pos_emb @ params["wpos"].T).reshape(1, -1, h, d_k).transpose(0, 2, 1, 3)
    q_u = (q + params["pos_bias_u"]).transpose(0, 2, 1, 3)
    q_v = (q + params["pos_bias_v"]).transpose(0, 2, 1, 3)
    ac = jnp.einsum("bhqd,bhkd->bhqk", q_u, k)
    bd = jnp.einsum("bhqd,bhkd->bhqk", q_v, jnp.broadcast_to(p, (B,) + p.shape[1:]))
    scores = (ac + bd) / math.sqrt(d_k)
    m = (mask[:, None, :, :] == 0)
    scores = jnp.where(m, -jnp.inf, scores)
    attn = jax.nn.softmax(scores, axis=-1)
    attn = jnp.where(m, 0.0, attn)
    x = jnp.einsum("bhqk,bhkd->bhqd", attn, v)
    x = x.transpose(0, 2, 1, 3).reshape(B, T1, n_feat)
    return x @ params["wo"].T + params["bo"]


# ----------------------------------------------------------------------------
# Deterministic parameter init + example run
# ----------------------------------------------------------------------------
def init_params(key, n_head, n_feat):
    d_k = n_feat // n_head
    ks = jax.random.split(key, 12)
    u = lambda k, shape, lim: jax.random.uniform(k, shape, jnp.float32, -lim, lim)
    lim_w = 1.0 / math.sqrt(n_feat)
    lim_uv = math.sqrt(6.0 / (n_head + d_k))   # xavier_uniform for (h, d_k)
    return {
        "h": n_head,
        "wq": u(ks[0], (n_feat, n_feat), lim_w), "bq": u(ks[1], (n_feat,), lim_w),
        "wk": u(ks[2], (n_feat, n_feat), lim_w), "bk": u(ks[3], (n_feat,), lim_w),
        "wv": u(ks[4], (n_feat, n_feat), lim_w), "bv": u(ks[5], (n_feat,), lim_w),
        "wo": u(ks[6], (n_feat, n_feat), lim_w), "bo": u(ks[7], (n_feat,), lim_w),
        "wpos": u(ks[8], (n_feat, n_feat), lim_w),
        "pos_bias_u": u(ks[9], (n_head, d_k), lim_uv),
        "pos_bias_v": u(ks[10], (n_head, d_k), lim_uv),
    }


if __name__ == "__main__":
    # small but lane-dense shapes: n_feat = 128 -> unmasked 128-lane stores
    B, T, n_feat, n_head = 2, 16, 128, 4

    root = jax.random.PRNGKey(0)
    k_param, k_x, k_pos = jax.random.split(root, 3)
    params = init_params(k_param, n_head, n_feat)

    x = jax.random.normal(k_x, (B, T, n_feat), jnp.float32)       # self-attention input
    pos_emb = jax.random.normal(k_pos, (1, T, n_feat), jnp.float32)

    # padding mask (B, 1, T2): second batch item has the last 2 frames masked out
    mask = jnp.ones((B, 1, T), jnp.float32).at[1, 0, -2:].set(0.0)

    out, new_cache = rel_position_mha_forward(
        params, x, x, x, mask=mask, pos_emb=pos_emb, cache=None)
    out = jax.block_until_ready(out)
    new_cache = jax.block_until_ready(new_cache)

    assert out.shape == (B, T, n_feat)
    assert new_cache.shape == (B, n_head, T, 2 * (n_feat // n_head))

    ref = _reference(params, x, x, x, mask, pos_emb)
    # tolerance accounts for bf16 MXU operands (f32 accumulation, f32 softmax)
    assert jnp.allclose(out, ref, atol=5e-2, rtol=5e-2), "mismatch vs JAX reference"

    print("KERNEL_OK")
</pallas_src>

<mosaic_0001>
module attributes {stable_mosaic.version = 11 : i64} {
  func.func @_linear_kernel(%arg0: i32, %arg1: memref<32x128xf32, #tpu.memory_space<vmem>>, %arg2: memref<128x384xbf16, #tpu.memory_space<vmem>>, %arg3: memref<1x384xf32, #tpu.memory_space<vmem>>, %arg4: memref<32x384xf32, #tpu.memory_space<vmem>>) attributes {dimension_semantics = [#tpu.dimension_semantics<parallel>], iteration_bounds = array<i64: 1>, scalar_prefetch = 0 : i64, scratch_operands = 0 : i64, tpu.core_type = #tpu.core_type<tc>, window_params = [{transform_indices = @transform_0, window_bounds = array<i64: 32, 128>}, {pipeline_mode = #tpu.pipeline_mode<synchronous>, transform_indices = @transform_1, window_bounds = array<i64: 128, 384>}, {pipeline_mode = #tpu.pipeline_mode<synchronous>, transform_indices = @transform_2, window_bounds = array<i64: 1, 384>}, {transform_indices = @transform_3, window_bounds = array<i64: 32, 384>}]} {
    %c0 = arith.constant 0 : index
    %c0_0 = arith.constant 0 : index
    %0 = vector.load %arg1[%c0, %c0_0] : memref<32x128xf32, #tpu.memory_space<vmem>>, vector<32x128xf32>
    %1 = arith.truncf %0 : vector<32x128xf32> to vector<32x128xbf16>
    %c0_1 = arith.constant 0 : index
    %c0_2 = arith.constant 0 : index
    %2 = vector.load %arg2[%c0_1, %c0_2] : memref<128x384xbf16, #tpu.memory_space<vmem>>, vector<128x384xbf16>
    %cst = arith.constant dense<0.000000e+00> : vector<32x384xf32>
    %3 = tpu.matmul %1, %2, %cst {dimension_numbers = #tpu.dot_dimension_numbers<[1], [0], [0], [1], [0, 0, 1, 1], [], []>} : vector<32x128xbf16>, vector<128x384xbf16>, vector<32x384xf32> -> vector<32x384xf32>
    %c0_3 = arith.constant 0 : index
    %c0_4 = arith.constant 0 : index
    %4 = vector.load %arg3[%c0_3, %c0_4] : memref<1x384xf32, #tpu.memory_space<vmem>>, vector<1x384xf32>
    %5 = vector.broadcast %4 : vector<1x384xf32> to vector<32x384xf32>
    %6 = arith.addf %3, %5 : vector<32x384xf32>
    %c0_5 = arith.constant 0 : index
    %c0_6 = arith.constant 0 : index
    %7 = vector.load %arg4[%c0_5, %c0_6] : memref<32x384xf32, #tpu.memory_space<vmem>>, vector<32x384xf32>
    tpu.vector_store %arg4[%c0_5, %c0_6], %6 {strides = array<i32>} : memref<32x384xf32, #tpu.memory_space<vmem>>, vector<32x384xf32>,
    return
  }
  func.func @transform_0(%arg0: i32) -> (i32, i32) {
    %c0_i32 = arith.constant 0 : i32
    %c0_i32_0 = arith.constant 0 : i32
    return %arg0, %c0_i32 : i32, i32
  }
  func.func @transform_1(%arg0: i32) -> (i32, i32) {
    %c0_i32 = arith.constant 0 : i32
    %c0_i32_0 = arith.constant 0 : i32
    %c0_i32_1 = arith.constant 0 : i32
    return %c0_i32, %c0_i32_0 : i32, i32
  }
  func.func @transform_2(%arg0: i32) -> (i32, i32) {
    %c0_i32 = arith.constant 0 : i32
    %c0_i32_0 = arith.constant 0 : i32
    %c0_i32_1 = arith.constant 0 : i32
    return %c0_i32, %c0_i32_0 : i32, i32
  }
  func.func @transform_3(%arg0: i32) -> (i32, i32) {
    %c0_i32 = arith.constant 0 : i32
    %c0_i32_0 = arith.constant 0 : i32
    return %arg0, %c0_i32 : i32, i32
  }
}

</mosaic_0001>

<bundles_post_ra>
// kernel: tpu_custom_call.1
= control target key start
LH: loop header
LB: loop body
LE: loop exit
PB: predicated region body
PF: predicated region fallthrough
CT: control target
= control target key end

     0   :  { %8 = vsyncpa [#allocation3], 0  ;;  %s565_s0 = inlined_call_operand.hbm [shape: f32[32,128], index: 0, kind: input, shape index: {}]   ;;  %s566_s1 = inlined_call_operand.hbm [shape: bf16[128,384], index: 1, kind: input, shape index: {}]   ;;  %s567_s2 = inlined_call_operand.vmem [shape: f32[1,384], index: 2, kind: input, shape index: {}]   ;;  %s568_s3 = inlined_call_operand.hbm [shape: f32[32,384], index: 3, kind: output, shape index: {}]  }
   0x1   :  { %9 = vsyncpa [#allocation6], 0 }
   0x2   :  { %10 = vsyncpa [#allocation4], 0  ;;  %s521_s12 = smov [#allocation2]  }
   0x3   :  { %s16_s13 = sshll.u32 %s521_s12, 4  ;;  %s17_s13 = int_to_ptr.vmem [resolvable:$true] %s16_s13 }
   0x4   :  { %s463_s14 = scalar_lea.vmem %s17_s13, 512  ;;  %p468_p1 = scmp.lt.s32.totalorder %s17_s13, %s17_s13 }
   0x5   :  { %p464_p0 = scmp.ne.s32.totalorder %s17_s13, %s463_s14  ;;  %p469_p2 = scmp.lt.s32.totalorder %s463_s14, %s463_s14 }
   0x7   :  { %p470_p3 = por %p469_p2, %p468_p1 }
   0x9   :  { %p471_p4 = pnand %p470_p3, %p464_p0 }
   0xb   :  { %474 = shalt.err (!%p471_p4)
}
   0xc   :  { %s522_s15 = smov 128   ;;  %s523_s16 = smov 8  }
   0xd   :  { %22 = dma.hbm_to_vmem [thread:$0]  %s565_s0, 512, %s17_s13, [#allocation3], %s522_s15, %s522_s15, %s523_s16  }
   0xe   :  { %s524_s19 = smov [#allocation5]  }
   0xf   :  { %s28_s20 = sshll.u32 %s524_s19, 4  ;;  %s29_s20 = int_to_ptr.vmem [resolvable:$true] %s28_s20 }
  0x10   :  { %s483_s21 = scalar_lea.vmem %s29_s20, 3072  ;;  %p488_p6 = scmp.lt.s32.totalorder %s29_s20, %s29_s20 }
  0x11   :  { %p484_p5 = scmp.ne.s32.totalorder %s29_s20, %s483_s21  ;;  %p489_p7 = scmp.lt.s32.totalorder %s483_s21, %s483_s21 }
  0x13   :  { %p490_p8 = por %p489_p7, %p488_p6 }
  0x15   :  { %p491_p9 = pnand %p490_p8, %p484_p5 }
  0x17   :  { %494 = shalt.err (!%p491_p9)
}
  0x18   :  { %s525_s22 = smov 192   ;;  %s526_s23 = smov 12  }
  0x19   :  { %34 = dma.hbm_to_vmem [thread:$0]  %s566_s1, 3072, %s29_s20, [#allocation6], %s525_s22, %s525_s22, %s526_s23  }
  0x1a   :  { %515 = dma.done.wait [#allocation3], 512  }
  0x1b   :  { %516 = vsyncadd [#allocation3], 4294966784 }
  0x1c   :  { %517 = dma.done.wait [#allocation6], 3072  }
  0x1d   :  { %518 = vsyncadd [#allocation6], 4294964224  ;;  %v527_v0 = vmov 0   ;;  %v423_v1 = vld [vmem:[#allocation5 + $0xac] ss:$12 sps:$4 sm:$0xff]   ;;  %v44_v18 = vld [vmem:[#allocation2] sm:$0xff]  ;;  %v84_v31 = vlaneseq }
  0x1e   :  { %259 = vmatprep.mubr.bf16.mxu0 %v527_v0  ;;  %v425_v2 = vld [vmem:[#allocation5 + $0xa8] ss:$12 sps:$4 sm:$0xff]   ;;  %227 = vmatprep.subr.bf16.mxu0 %v423_v1  ;;  %v426_v3 = vld [vmem:[#allocation5 + $0xb0] ss:$12 sps:$4 sm:$0xff]   ;;  %v430_v6 = vld [vmem:[#allocation5 + $0x98] ss:$12 sps:$4 sm:$0xff]  }
  0x1f   :  { %228 = vmatpush1.bf16.msra.mxu0 %v425_v2  ;;  %v427_v4 = vld [vmem:[#allocation5 + $0x94] ss:$12 sps:$4 sm:$0xff]   ;;  %v429_v5 = vld [vmem:[#allocation5 + $0x90] ss:$12 sps:$4 sm:$0xff]   ;;  %393 = vmatprep.subr.bf16.mxu1 %v426_v3  ;;  %v433_v9 = vld [vmem:[#allocation5 + $0x78] ss:$12 sps:$4 sm:$0xff]  }
  0x20   :  { %394 = vmatpush3.bf16.msra.mxu1 %v426_v3  ;;  %229 = vmatprep.subr.bf16.mxu0 %v427_v4  ;;  %v431_v7 = vld [vmem:[#allocation5 + $0x7c] ss:$12 sps:$4 sm:$0xff]   ;;  %v434_v8 = vld [vmem:[#allocation5 + $0x80] ss:$12 sps:$4 sm:$0xff]   ;;  %v435_v10 = vld [vmem:[#allocation5 + $0x64] ss:$12 sps:$4 sm:$0xff]  }
  0x21   :  { %395 = vmatprep.subr.bf16.mxu1 %v430_v6  ;;  %v438_v11 = vld [vmem:[#allocation5 + $0x68] ss:$12 sps:$4 sm:$0xff]   ;;  %v437_v12 = vld [vmem:[#allocation5 + $0x60] ss:$12 sps:$4 sm:$0xff]   ;;  %v442_v14 = vld [vmem:[#allocation5 + $0x50] ss:$12 sps:$4 sm:$0xff]  }
  0x22   :  { %v439_v13 = vld [vmem:[#allocation5 + $0x4c] ss:$12 sps:$4 sm:$0xff]   ;;  %v441_v15 = vld [vmem:[#allocation5 + $0x48] ss:$12 sps:$4 sm:$0xff]   ;;  %v445_v19 = vld [vmem:[#allocation5 + $0x30] ss:$12 sps:$4 sm:$0xff]  }
  0x23   :  { %230 = vmatpush1.bf16.msra.mxu0 %v429_v5  ;;  %v443_v16 = vld [vmem:[#allocation5 + $0x34] ss:$12 sps:$4 sm:$0xff]   ;;  %v446_v17 = vld [vmem:[#allocation5 + $0x38] ss:$12 sps:$4 sm:$0xff]   ;;  %v45_v20 = vld [vmem:[#allocation2 + $0x8] sm:$0xff]  ;;  %v85_v32 = vshrl.u32 %v84_v31, 7 }
  0x24   :  { %231 = vmatprep.subr.bf16.mxu0 %v431_v7  ;;  %396 = vmatpush3.bf16.msra.mxu1 %v430_v6  ;;  %v447_v21 = vld [vmem:[#allocation5 + $0x1c] ss:$12 sps:$4 sm:$0xff]   ;;  %v48_v22 = vpack.c.bf16 %v45_v20, %v44_v18  ;;  %v450_v23 = vld [vmem:[#allocation5 + $0x20] ss:$12 sps:$4 sm:$0xff]   ;;  %v449_v24 = vld [vmem:[#allocation5 + $0x18] ss:$12 sps:$4 sm:$0xff]  }
  0x25   :  { %397 = vmatprep.subr.bf16.mxu1 %v434_v8  ;;  %v451_v25 = vld [vmem:[#allocation5 + $0x4] ss:$12 sps:$4 sm:$0xff]   ;;  %v454_v26 = vld [vmem:[#allocation5 + $0x8] ss:$12 sps:$4 sm:$0xff]   ;;  %v453_v27 = vld [vmem:[#allocation5] ss:$12 sps:$4 sm:$0xff]  }
  0x26   :  { %409 = vmatprep.mubr.bf16.mxu1 %v48_v22  ;;  %v46_v28 = vld [vmem:[#allocation2 + $0x10] sm:$0xff]  ;;  %v47_v29 = vld [vmem:[#allocation2 + $0x18] sm:$0xff]  ;;  %v86_v33 = vsub.s32 0, %v85_v32  ;;  %v82_v34 = vld [vmem:[%s567_s2] sm:$0x7]  ;;  %v90_v35 = vsub.s32 1, %v85_v32 }
  0x27   :  { %232 = vmatpush1.bf16.msra.mxu0 %v433_v9  ;;  %v49_v30 = vpack.c.bf16 %v47_v29, %v46_v28  ;;  %v94_v36 = vsub.s32 2, %v85_v32  ;;  %s528_s2 = smov [#allocation7]  }
  0x28   :  { %233 = vmatprep.subr.bf16.mxu0 %v435_v10  ;;  %398 = vmatpush3.bf16.msra.mxu1 %v434_v8  ;;  %v87_v37 = vrot.slane %v82_v34, %v86_v33  ;;  %v91_v38 = vrot.slane %v82_v34, %v90_v35  ;;  %s346_s26 = sshll.u32 %s528_s2, 4  ;;  %s347_s26 = int_to_ptr.vmem [resolvable:$true] %s346_s26 }
  0x29   :  { %399 = vmatprep.subr.bf16.mxu1 %v438_v11  ;;  %v95_v39 = vrot.slane %v82_v34, %v94_v36  ;;  %s495_s27 = scalar_lea.vmem %s347_s26, 1536  ;;  %p500_p11 = scmp.lt.s32.totalorder %s347_s26, %s347_s26 }
  0x2a   :  { %p496_p10 = scmp.ne.s32.totalorder %s347_s26, %s495_s27  ;;  %p501_p12 = scmp.lt.s32.totalorder %s495_s27, %s495_s27 }
  0x2b   :  { %234 = vmatpush1.bf16.msra.mxu0 %v437_v12 }
  0x2c   :  { %235 = vmatprep.subr.bf16.mxu0 %v439_v13  ;;  %400 = vmatpush3.bf16.msra.mxu1 %v438_v11  ;;  %p502_p13 = por %p501_p12, %p500_p11 }
  0x2d   :  { %401 = vmatprep.subr.bf16.mxu1 %v442_v14 }
  0x2e   :  { %p503_p0 = pnand %p502_p13, %p496_p10 }
  0x2f   :  { %236 = vmatpush1.bf16.msra.mxu0 %v441_v15 }
  0x30   :  { %237 = vmatprep.subr.bf16.mxu0 %v443_v16  ;;  %402 = vmatpush3.bf16.msra.mxu1 %v442_v14 }
  0x31   :  { %403 = vmatprep.subr.bf16.mxu1 %v446_v17 }
  0x33   :  { %238 = vmatpush1.bf16.msra.mxu0 %v445_v19 }
  0x34   :  { %239 = vmatprep.subr.bf16.mxu0 %v447_v21  ;;  %404 = vmatpush3.bf16.msra.mxu1 %v446_v17 }
  0x35   :  { %405 = vmatprep.subr.bf16.mxu1 %v450_v23 }
  0x37   :  { %240 = vmatpush1.bf16.msra.mxu0 %v449_v24 }
  0x38   :  { %241 = vmatprep.subr.bf16.mxu0 %v451_v25  ;;  %406 = vmatpush3.bf16.msra.mxu1 %v450_v23 }
  0x39   :  { %407 = vmatprep.subr.bf16.mxu1 %v454_v26 }
  0x3b   :  { %242 = vmatpush1.bf16.msra.mxu0 %v453_v27 }
  0x3c   :  { %408 = vmatpush3.bf16.msra.mxu1 %v454_v26 }
  0x3e   :  { %260 = vmatmul.mubr.bf16.vlgmr.msra.gmra.mxu0 %v48_v22 }
  0x3f   :  { %269 = vmatprep.mubr.bf16.mxu0 %v527_v0  ;;  %410 = vmatmul.mubr.bf16.vlgmr.msra.gmra.mxu1 %v49_v30 }
  0x46   :  { %270 = vmatmul.mubr.bf16.gmra.mxu0 %v49_v30 }
  0xfe   :  { %v261_v40 = vpop.f32.mrf.mxu0 }
  0xff   :  { %v262_v41 = vadd.f32 %v261_v40, %v87_v37  ;;  %v411_v43 = vpop.f32.mrf.mxu1 }
 0x100   :  { %v263_v42 = vpop.f32.mrf.mxu0  ;;  %v323_v45 = vadd.f32 %v411_v43, %v95_v39 }
 0x101   :  { %329 = vst [vmem:[#allocation7] sm:$0xff] %v262_v41  ;;  %v264_v44 = vadd.f32 %v263_v42, %v91_v38  ;;  %v314_v47 = vpop.f32.mrf.mxu1 }
 0x102   :  { %v265_v46 = vpop.f32.mrf.mxu0  ;;  %337 = vst [vmem:[#allocation7 + $0x40] sm:$0xff] %v323_v45  ;;  %v315_v49 = vadd.f32 %v314_v47, %v95_v39 }
 0x103   :  { %330 = vst [vmem:[#allocation7 + $0x8] sm:$0xff] %v264_v44  ;;  %v266_v48 = vadd.f32 %v265_v46, %v87_v37  ;;  %v412_v51 = vpop.f32.mrf.mxu1 }
 0x104   :  { %v267_v50 = vpop.f32.mrf.mxu0  ;;  %331 = vst [vmem:[#allocation7 + $0x10] sm:$0xff] %v315_v49  ;;  %v326_v53 = vadd.f32 %v412_v51, %v95_v39 }
 0x105   :  { %332 = vst [vmem:[#allocation7 + $0x18] sm:$0xff] %v266_v48  ;;  %v268_v52 = vadd.f32 %v267_v50, %v91_v38  ;;  %v317_v55 = vpop.f32.mrf.mxu1 }
 0x106   :  { %v271_v54 = vpop.f32.mrf.mxu0  ;;  %340 = vst [vmem:[#allocation7 + $0x58] sm:$0xff] %v326_v53  ;;  %v318_v57 = vadd.f32 %v317_v55, %v95_v39 }
 0x107   :  { %333 = vst [vmem:[#allocation7 + $0x20] sm:$0xff] %v268_v52  ;;  %v272_v56 = vadd.f32 %v271_v54, %v87_v37 }
 0x108   :  { %v273_v58 = vpop.f32.mrf.mxu0  ;;  %334 = vst [vmem:[#allocation7 + $0x28] sm:$0xff] %v318_v57 }
 0x109   :  { %335 = vst [vmem:[#allocation7 + $0x30] sm:$0xff] %v272_v56  ;;  %v274_v59 = vadd.f32 %v273_v58, %v91_v38 }
 0x10a   :  { %v275_v60 = vpop.f32.mrf.mxu0 }
 0x10b   :  { %336 = vst [vmem:[#allocation7 + $0x38] sm:$0xff] %v274_v59  ;;  %v276_v61 = vadd.f32 %v275_v60, %v87_v37 }
 0x10c   :  { %v277_v62 = vpop.f32.mrf.mxu0 }
 0x10d   :  { %338 = vst [vmem:[#allocation7 + $0x48] sm:$0xff] %v276_v61  ;;  %v278_v63 = vadd.f32 %v277_v62, %v91_v38 }
 0x10f   :  { %339 = vst [vmem:[#allocation7 + $0x50] sm:$0xff] %v278_v63 }
 0x110   :  { %506 = shalt.err (!%p503_p0)
}
 0x111   :  { %s529_s28 = smov 384   ;;  %s530_s29 = smov 24  }
 0x112   :  { %352 = dma.vmem_to_hbm [thread:$0]  %s347_s26, 1536, %s568_s3, [#allocation4], %s529_s28, %s529_s28, %s530_s29  }
 0x113   :  { %519 = dma.done.wait [#allocation4], 1536  }
 0x114   :  { %520 = vsyncadd [#allocation4], 4294965760 }
 0x115   :  { %356 = vsyncpa [#allocation3], 1 }
 0x116   :  { %357 = vsyncpa [#allocation6], 1 }
 0x117   :  { %358 = vsyncpa [#allocation4], 1 }

</bundles_post_ra>
